<compile_context>
chip_gen: v6e
topology: v6e:2x2x1
jax: 0.10.0
libtpu: 0.0.40
codegen_flags: <defaults>
</compile_context>

<pallas_src>
import functools

import jax
import jax.numpy as jnp
from jax.experimental import pallas as pl
from jax.experimental.pallas import tpu as pltpu


# ----------------------------- Pallas kernels ------------------------------


def _encode_kernel(x_ref, w1_ref, b1_ref, w2_ref, b2_ref, wh_ref, bh_ref,
                   alpha_ref, rho_ref,
                   kl_ref, theta_ref, m_ref, l_ref,
                   h1_acc, m_acc, l_acc):
    """Pass 1: encoder (V-contraction) + online softmax stats for beta."""
    v = pl.program_id(0)

    @pl.when(v == 0)
    def _init():
        h1_acc[...] = jnp.zeros_like(h1_acc)
        m_acc[...] = jnp.full_like(m_acc, -jnp.inf)
        l_acc[...] = jnp.zeros_like(l_acc)

    # Encoder layer-1 partial sum over the vocab tile (bf16 MXU, f32 acc).
    h1_acc[...] += jnp.dot(x_ref[...].astype(jnp.bfloat16), w1_ref[...],
                           preferred_element_type=jnp.float32)

    # Streaming max / sum-of-exp for the vocab softmax of beta.
    prod = jnp.dot(alpha_ref[...], rho_ref[...],
                   preferred_element_type=jnp.float32)            # (K, tv)
    m_new = jnp.maximum(m_acc[...], jnp.max(prod, axis=-1, keepdims=True))
    l_acc[...] = (l_acc[...] * jnp.exp(m_acc[...] - m_new)
                  + jnp.sum(jnp.exp(prod - m_new), axis=-1, keepdims=True))
    m_acc[...] = m_new

    @pl.when(v == pl.num_programs(0) - 1)
    def _finalize():
        K = theta_ref.shape[1]
        h1 = jnp.maximum(h1_acc[...] + b1_ref[...], 0.0)           # (B, H)
        h2 = jnp.maximum(
            jnp.dot(h1.astype(jnp.bfloat16), w2_ref[...],
                    preferred_element_type=jnp.float32) + b2_ref[...], 0.0)
        heads = jnp.dot(h2, wh_ref[...],
                        preferred_element_type=jnp.float32) + bh_ref[...]  # (B, 2K)
        mu = heads[:, :K]
        ls = heads[:, K:]
        term = 1.0 - jnp.exp(ls) - mu * mu + ls
        kl_ref[...] = -0.5 * jnp.sum(term, axis=-1, keepdims=True)  # (B, 1)
        # theta = softmax(mu)  (eval-mode z = mu)
        mm = jnp.max(mu, axis=-1, keepdims=True)
        e = jnp.exp(mu - mm)
        theta_ref[...] = e / jnp.sum(e, axis=-1, keepdims=True)     # (B, K)
        m_ref[...] = m_acc[...]
        l_ref[...] = l_acc[...]


def _decode_kernel(theta_ref, m_ref, l_ref, alpha_ref, rho_ref, preds_ref):
    """Pass 2: beta tile from global stats, lane-dense preds tile."""
    prod = jnp.dot(alpha_ref[...], rho_ref[...],
                   preferred_element_type=jnp.float32)              # (K, tv)
    beta = jnp.exp(prod - m_ref[...]) / l_ref[...]                  # (K, tv)
    preds_ref[...] = jnp.dot(theta_ref[...], beta,
                             preferred_element_type=jnp.float32)    # (B, tv)


# ------------------------------- Wrapper -----------------------------------


def _const_spec(shape):
    return pl.BlockSpec(shape, lambda v: (0, 0))


@functools.partial(jax.jit, static_argnames=("tv",))
def etm_forward(x, params, *, tv=512):
    B, V = x.shape
    H = params["w1"].shape[1]
    K = params["w_heads"].shape[1] // 2
    R = params["rho_t"].shape[0]
    assert V % tv == 0, "vocab must be divisible by the vocab tile size"
    nv = V // tv

    vmem_limit = 48 * 1024 * 1024
    cp_reduce = pltpu.CompilerParams(dimension_semantics=("arbitrary",),
                                     vmem_limit_bytes=vmem_limit)
    cp_parallel = pltpu.CompilerParams(dimension_semantics=("parallel",),
                                       vmem_limit_bytes=vmem_limit)

    # Pass 1: encoder + beta-softmax statistics (V is the reduction axis).
    kl2d, theta, m_k, l_k = pl.pallas_call(
        _encode_kernel,
        out_shape=(
            jax.ShapeDtypeStruct((B, 1), jnp.float32),   # kl
            jax.ShapeDtypeStruct((B, K), jnp.float32),   # theta
            jax.ShapeDtypeStruct((K, 1), jnp.float32),   # per-topic max of logits
            jax.ShapeDtypeStruct((K, 1), jnp.float32),   # per-topic sum of exp
        ),
        grid_spec=pltpu.PrefetchScalarGridSpec(
            num_scalar_prefetch=0,
            grid=(nv,),
            in_specs=[
                pl.BlockSpec((B, tv), lambda v: (0, v)),   # x tile
                pl.BlockSpec((tv, H), lambda v: (v, 0)),   # W1 tile (bf16)
                _const_spec((1, H)),                       # b1
                _const_spec((H, H)),                       # W2 (bf16)
                _const_spec((1, H)),                       # b2
                _const_spec((H, 2 * K)),                   # [Wmu | Wls]
                _const_spec((1, 2 * K)),                   # [bmu | bls]
                _const_spec((K, R)),                       # alpha (K, R) bf16
                pl.BlockSpec((R, tv), lambda v: (0, v)),   # rho^T tile (bf16)
            ],
            out_specs=[
                _const_spec((B, 1)),
                _const_spec((B, K)),
                _const_spec((K, 1)),
                _const_spec((K, 1)),
            ],
            scratch_shapes=[
                pltpu.VMEM((B, H), jnp.float32),   # h1 accumulator
                pltpu.VMEM((K, 1), jnp.float32),   # running max
                pltpu.VMEM((K, 1), jnp.float32),   # running sum-of-exp
            ],
        ),
        compiler_params=cp_reduce,
    )(x, params["w1"], params["b1"], params["w2"], params["b2"],
      params["w_heads"], params["b_heads"], params["alpha_kr"], params["rho_t"])

    # Pass 2: decoder, V is a parallel output axis with lane-dense tiles.
    preds = pl.pallas_call(
        _decode_kernel,
        out_shape=jax.ShapeDtypeStruct((B, V), jnp.float32),
        grid_spec=pltpu.PrefetchScalarGridSpec(
            num_scalar_prefetch=0,
            grid=(nv,),
            in_specs=[
                _const_spec((B, K)),                       # theta
                _const_spec((K, 1)),                       # max
                _const_spec((K, 1)),                       # sum
                _const_spec((K, R)),                       # alpha
                pl.BlockSpec((R, tv), lambda v: (0, v)),   # rho^T tile
            ],
            out_specs=pl.BlockSpec((B, tv), lambda v: (0, v)),
        ),
        compiler_params=cp_parallel,
    )(theta, m_k, l_k, params["alpha_kr"], params["rho_t"])

    kl_theta = kl2d[:, 0]
    return preds, kl_theta, -kl_theta


# ----------------------------- Reference (JAX) ------------------------------


def etm_forward_ref(x, p):
    f32 = jnp.float32
    bf16 = jnp.bfloat16
    h1 = jax.nn.relu(jnp.dot(x.astype(bf16), p["w1"],
                             preferred_element_type=f32) + p["b1"])
    h2 = jax.nn.relu(jnp.dot(h1.astype(bf16), p["w2"],
                             preferred_element_type=f32) + p["b2"])
    heads = jnp.dot(h2, p["w_heads"], preferred_element_type=f32) + p["b_heads"]
    K = p["w_heads"].shape[1] // 2
    mu, ls = heads[:, :K], heads[:, K:]
    term = 1.0 - jnp.exp(ls) - mu ** 2 + ls
    kl = -0.5 * jnp.sum(term, axis=-1)
    theta = jax.nn.softmax(mu, axis=-1)
    prod = jnp.dot(p["alpha_kr"], p["rho_t"], preferred_element_type=f32)  # (K, V)
    beta = jax.nn.softmax(prod, axis=-1)           # == softmax(rho@alpha.T, dim=0).T
    preds = jnp.dot(theta, beta, preferred_element_type=f32)
    return preds, kl, -kl


# --------------------------------- Main -------------------------------------

if __name__ == "__main__":
    # Small shapes consistent with the module's forward.
    B = 8      # batch of documents
    V = 512    # vocab_size (multiple of the 256 vocab tile -> 2 grid steps)
    H = 128    # t_hidden_size
    K = 16     # num_topics
    R = 64     # rho_size (word-embedding dim)
    TV = 256   # vocab tile (multiple of 128)

    key = jax.random.PRNGKey(0)
    ks = jax.random.split(key, 10)

    def init(k, shape, scale=0.05, dtype=jnp.float32):
        return (scale * jax.random.normal(k, shape, dtype=jnp.float32)).astype(dtype)

    params = {
        # q_theta: Linear(V, H) -> ReLU -> Linear(H, H) -> ReLU  (weights pre-transposed)
        "w1": init(ks[0], (V, H), dtype=jnp.bfloat16),
        "b1": init(ks[1], (1, H)),
        "w2": init(ks[2], (H, H), dtype=jnp.bfloat16),
        "b2": init(ks[3], (1, H)),
        # fused mu / logsigma heads: [Wmu | Wls] (H, 2K), [bmu | bls] (1, 2K)
        "w_heads": init(ks[4], (H, 2 * K)),
        "b_heads": init(ks[5], (1, 2 * K)),
        # topic_embeddings_alphas.weight (K, R); vocab embeddings rho stored transposed (R, V)
        "alpha_kr": init(ks[6], (K, R), scale=0.5, dtype=jnp.bfloat16),
        "rho_t": init(ks[7], (R, V), scale=0.5, dtype=jnp.bfloat16),
    }

    # normalized bag-of-words input: nonnegative, rows sum to 1
    raw = jax.random.uniform(ks[8], (B, V), dtype=jnp.float32)
    x = raw / jnp.sum(raw, axis=-1, keepdims=True)

    preds, kl, kl_plot = etm_forward(x, params, tv=TV)
    jax.block_until_ready((preds, kl, kl_plot))

    preds_r, kl_r, klp_r = etm_forward_ref(x, params)
    assert preds.shape == (B, V) and kl.shape == (B,) and kl_plot.shape == (B,)
    assert jnp.allclose(preds, preds_r, atol=1e-4, rtol=1e-2)
    assert jnp.allclose(kl, kl_r, atol=1e-3, rtol=1e-2)
    assert jnp.allclose(kl_plot, klp_r, atol=1e-3, rtol=1e-2)

    print("KERNEL_OK")
</pallas_src>

<mosaic_0001>
module attributes {stable_mosaic.version = 11 : i64} {
  func.func @_encode_kernel(%arg0: i32, %arg1: memref<8x256xf32, #tpu.memory_space<vmem>>, %arg2: memref<256x128xbf16, #tpu.memory_space<vmem>>, %arg3: memref<1x128xf32, #tpu.memory_space<vmem>>, %arg4: memref<128x128xbf16, #tpu.memory_space<vmem>>, %arg5: memref<1x128xf32, #tpu.memory_space<vmem>>, %arg6: memref<128x32xf32, #tpu.memory_space<vmem>>, %arg7: memref<1x32xf32, #tpu.memory_space<vmem>>, %arg8: memref<16x64xbf16, #tpu.memory_space<vmem>>, %arg9: memref<64x256xbf16, #tpu.memory_space<vmem>>, %arg10: memref<8x1xf32, #tpu.memory_space<vmem>>, %arg11: memref<8x16xf32, #tpu.memory_space<vmem>>, %arg12: memref<16x1xf32, #tpu.memory_space<vmem>>, %arg13: memref<16x1xf32, #tpu.memory_space<vmem>>, %arg14: memref<8x128xf32, #tpu.memory_space<vmem>>, %arg15: memref<16x1xf32, #tpu.memory_space<vmem>>, %arg16: memref<16x1xf32, #tpu.memory_space<vmem>>) attributes {dimension_semantics = [#tpu.dimension_semantics<arbitrary>], iteration_bounds = array<i64: 2>, scalar_prefetch = 0 : i64, scratch_operands = 3 : i64, tpu.core_type = #tpu.core_type<tc>, window_params = [{transform_indices = @transform_0, window_bounds = array<i64: 8, 256>}, {transform_indices = @transform_1, window_bounds = array<i64: 256, 128>}, {pipeline_mode = #tpu.pipeline_mode<synchronous>, transform_indices = @transform_2, window_bounds = array<i64: 1, 128>}, {pipeline_mode = #tpu.pipeline_mode<synchronous>, transform_indices = @transform_3, window_bounds = array<i64: 128, 128>}, {pipeline_mode = #tpu.pipeline_mode<synchronous>, transform_indices = @transform_4, window_bounds = array<i64: 1, 128>}, {pipeline_mode = #tpu.pipeline_mode<synchronous>, transform_indices = @transform_5, window_bounds = array<i64: 128, 32>}, {pipeline_mode = #tpu.pipeline_mode<synchronous>, transform_indices = @transform_6, window_bounds = array<i64: 1, 32>}, {pipeline_mode = #tpu.pipeline_mode<synchronous>, transform_indices = @transform_7, window_bounds = array<i64: 16, 64>}, {transform_indices = @transform_8, window_bounds = array<i64: 64, 256>}, {pipeline_mode = #tpu.pipeline_mode<synchronous>, transform_indices = @transform_9, window_bounds = array<i64: 8, 1>}, {pipeline_mode = #tpu.pipeline_mode<synchronous>, transform_indices = @transform_10, window_bounds = array<i64: 8, 16>}, {pipeline_mode = #tpu.pipeline_mode<synchronous>, transform_indices = @transform_11, window_bounds = array<i64: 16, 1>}, {pipeline_mode = #tpu.pipeline_mode<synchronous>, transform_indices = @transform_12, window_bounds = array<i64: 16, 1>}]} {
    %c0_i32 = arith.constant 0 : i32
    %0 = arith.cmpi eq, %arg0, %c0_i32 : i32
    %1 = arith.extui %0 : i1 to i32
    %c0_i32_0 = arith.constant 0 : i32
    %2 = arith.cmpi ne, %1, %c0_i32_0 : i32
    scf.if %2 {
      %cst_26 = arith.constant 0.000000e+00 : f32
      %33 = vector.broadcast %cst_26 : f32 to vector<8x128xf32>
      %c0_27 = arith.constant 0 : index
      %c0_28 = arith.constant 0 : index
      %34 = vector.load %arg14[%c0_27, %c0_28] : memref<8x128xf32, #tpu.memory_space<vmem>>, vector<8x128xf32>
      tpu.vector_store %arg14[%c0_27, %c0_28], %33 {strides = array<i32>} : memref<8x128xf32, #tpu.memory_space<vmem>>, vector<8x128xf32>,
      %cst_29 = arith.constant 0xFF800000 : f32
      %35 = vector.broadcast %cst_29 : f32 to vector<16x1xf32>
      %c0_30 = arith.constant 0 : index
      %c0_31 = arith.constant 0 : index
      %36 = vector.load %arg15[%c0_30, %c0_31] : memref<16x1xf32, #tpu.memory_space<vmem>>, vector<16x1xf32>
      tpu.vector_store %arg15[%c0_30, %c0_31], %35 {strides = array<i32>} : memref<16x1xf32, #tpu.memory_space<vmem>>, vector<16x1xf32>,
      %cst_32 = arith.constant 0.000000e+00 : f32
      %37 = vector.broadcast %cst_32 : f32 to vector<16x1xf32>
      %c0_33 = arith.constant 0 : index
      %c0_34 = arith.constant 0 : index
      %38 = vector.load %arg16[%c0_33, %c0_34] : memref<16x1xf32, #tpu.memory_space<vmem>>, vector<16x1xf32>
      tpu.vector_store %arg16[%c0_33, %c0_34], %37 {strides = array<i32>} : memref<16x1xf32, #tpu.memory_space<vmem>>, vector<16x1xf32>,
    } else {
    }
    %c0 = arith.constant 0 : index
    %c0_1 = arith.constant 0 : index
    %3 = vector.load %arg14[%c0, %c0_1] : memref<8x128xf32, #tpu.memory_space<vmem>>, vector<8x128xf32>
    %c0_2 = arith.constant 0 : index
    %c0_3 = arith.constant 0 : index
    %4 = vector.load %arg1[%c0_2, %c0_3] : memref<8x256xf32, #tpu.memory_space<vmem>>, vector<8x256xf32>
    %5 = arith.truncf %4 : vector<8x256xf32> to vector<8x256xbf16>
    %c0_4 = arith.constant 0 : index
    %c0_5 = arith.constant 0 : index
    %6 = vector.load %arg2[%c0_4, %c0_5] : memref<256x128xbf16, #tpu.memory_space<vmem>>, vector<256x128xbf16>
    %cst = arith.constant dense<0.000000e+00> : vector<8x128xf32>
    %7 = tpu.matmul %5, %6, %cst {dimension_numbers = #tpu.dot_dimension_numbers<[1], [0], [0], [1], [0, 0, 1, 1], [], []>} : vector<8x256xbf16>, vector<256x128xbf16>, vector<8x128xf32> -> vector<8x128xf32>
    %8 = arith.addf %3, %7 : vector<8x128xf32>
    %c0_6 = arith.constant 0 : index
    %c0_7 = arith.constant 0 : index
    %9 = vector.load %arg14[%c0_6, %c0_7] : memref<8x128xf32, #tpu.memory_space<vmem>>, vector<8x128xf32>
    tpu.vector_store %arg14[%c0_6, %c0_7], %8 {strides = array<i32>} : memref<8x128xf32, #tpu.memory_space<vmem>>, vector<8x128xf32>,
    %c0_8 = arith.constant 0 : index
    %c0_9 = arith.constant 0 : index
    %10 = vector.load %arg8[%c0_8, %c0_9] : memref<16x64xbf16, #tpu.memory_space<vmem>>, vector<16x64xbf16>
    %c0_10 = arith.constant 0 : index
    %c0_11 = arith.constant 0 : index
    %11 = vector.load %arg9[%c0_10, %c0_11] : memref<64x256xbf16, #tpu.memory_space<vmem>>, vector<64x256xbf16>
    %cst_12 = arith.constant dense<0.000000e+00> : vector<16x256xf32>
    %12 = tpu.matmul %10, %11, %cst_12 {dimension_numbers = #tpu.dot_dimension_numbers<[1], [0], [0], [1], [0, 0, 1, 1], [], []>} : vector<16x64xbf16>, vector<64x256xbf16>, vector<16x256xf32> -> vector<16x256xf32>
    %c0_13 = arith.constant 0 : index
    %c0_14 = arith.constant 0 : index
    %13 = vector.load %arg15[%c0_13, %c0_14] : memref<16x1xf32, #tpu.memory_space<vmem>>, vector<16x1xf32>
    %cst_15 = arith.constant dense<0xFF800000> : vector<16xf32>
    %14 = vector.multi_reduction <maximumf>, %12, %cst_15 [1] : vector<16x256xf32> to vector<16xf32>
    %15 = vector.shape_cast %14 : vector<16xf32> to vector<16x1xf32>
    %16 = arith.maximumf %13, %15 : vector<16x1xf32>
    %c0_16 = arith.constant 0 : index
    %c0_17 = arith.constant 0 : index
    %17 = vector.load %arg16[%c0_16, %c0_17] : memref<16x1xf32, #tpu.memory_space<vmem>>, vector<16x1xf32>
    %c0_18 = arith.constant 0 : index
    %c0_19 = arith.constant 0 : index
    %18 = vector.load %arg15[%c0_18, %c0_19] : memref<16x1xf32, #tpu.memory_space<vmem>>, vector<16x1xf32>
    %19 = arith.subf %18, %16 : vector<16x1xf32>
    %20 = math.exp %19 : vector<16x1xf32>
    %21 = arith.mulf %17, %20 : vector<16x1xf32>
    %22 = vector.broadcast %16 : vector<16x1xf32> to vector<16x256xf32>
    %23 = arith.subf %12, %22 : vector<16x256xf32>
    %24 = math.exp %23 : vector<16x256xf32>
    %cst_20 = arith.constant dense<0.000000e+00> : vector<16xf32>
    %25 = vector.multi_reduction <add>, %24, %cst_20 [1] : vector<16x256xf32> to vector<16xf32>
    %26 = vector.shape_cast %25 : vector<16xf32> to vector<16x1xf32>
    %27 = arith.addf %21, %26 : vector<16x1xf32>
    %c0_21 = arith.constant 0 : index
    %c0_22 = arith.constant 0 : index
    %28 = vector.load %arg16[%c0_21, %c0_22] : memref<16x1xf32, #tpu.memory_space<vmem>>, vector<16x1xf32>
    tpu.vector_store %arg16[%c0_21, %c0_22], %27 {strides = array<i32>} : memref<16x1xf32, #tpu.memory_space<vmem>>, vector<16x1xf32>,
    %c0_23 = arith.constant 0 : index
    %c0_24 = arith.constant 0 : index
    %29 = vector.load %arg15[%c0_23, %c0_24] : memref<16x1xf32, #tpu.memory_space<vmem>>, vector<16x1xf32>
    tpu.vector_store %arg15[%c0_23, %c0_24], %16 {strides = array<i32>} : memref<16x1xf32, #tpu.memory_space<vmem>>, vector<16x1xf32>,
    %c1_i32 = arith.constant 1 : i32
    %30 = arith.cmpi eq, %arg0, %c1_i32 : i32
    %31 = arith.extui %30 : i1 to i32
    %c0_i32_25 = arith.constant 0 : i32
    %32 = arith.cmpi ne, %31, %c0_i32_25 : i32
    scf.if %32 {
      %c0_26 = arith.constant 0 : index
      %c0_27 = arith.constant 0 : index
      %33 = vector.load %arg14[%c0_26, %c0_27] : memref<8x128xf32, #tpu.memory_space<vmem>>, vector<8x128xf32>
      %c0_28 = arith.constant 0 : index
      %c0_29 = arith.constant 0 : index
      %34 = vector.load %arg3[%c0_28, %c0_29] : memref<1x128xf32, #tpu.memory_space<vmem>>, vector<1x128xf32>
      %35 = vector.broadcast %34 : vector<1x128xf32> to vector<8x128xf32>
      %36 = arith.addf %33, %35 : vector<8x128xf32>
      %cst_30 = arith.constant 0.000000e+00 : f32
      %37 = vector.broadcast %cst_30 : f32 to vector<8x128xf32>
      %38 = arith.maximumf %36, %37 : vector<8x128xf32>
      %39 = arith.truncf %38 : vector<8x128xf32> to vector<8x128xbf16>
      %c0_31 = arith.constant 0 : index
      %c0_32 = arith.constant 0 : index
      %40 = vector.load %arg4[%c0_31, %c0_32] : memref<128x128xbf16, #tpu.memory_space<vmem>>, vector<128x128xbf16>
      %cst_33 = arith.constant dense<0.000000e+00> : vector<8x128xf32>
      %41 = tpu.matmul %39, %40, %cst_33 {dimension_numbers = #tpu.dot_dimension_numbers<[1], [0], [0], [1], [0, 0, 1, 1], [], []>} : vector<8x128xbf16>, vector<128x128xbf16>, vector<8x128xf32> -> vector<8x128xf32>
      %c0_34 = arith.constant 0 : index
      %c0_35 = arith.constant 0 : index
      %42 = vector.load %arg5[%c0_34, %c0_35] : memref<1x128xf32, #tpu.memory_space<vmem>>, vector<1x128xf32>
      %43 = vector.broadcast %42 : vector<1x128xf32> to vector<8x128xf32>
      %44 = arith.addf %41, %43 : vector<8x128xf32>
      %cst_36 = arith.constant 0.000000e+00 : f32
      %45 = vector.broadcast %cst_36 : f32 to vector<8x128xf32>
      %46 = arith.maximumf %44, %45 : vector<8x128xf32>
      %c0_37 = arith.constant 0 : index
      %c0_38 = arith.constant 0 : index
      %47 = vector.load %arg6[%c0_37, %c0_38] : memref<128x32xf32, #tpu.memory_space<vmem>>, vector<128x32xf32>
      %cst_39 = arith.constant dense<0.000000e+00> : vector<8x32xf32>
      %48 = tpu.matmul %46, %47, %cst_39 {dimension_numbers = #tpu.dot_dimension_numbers<[1], [0], [0], [1], [0, 0, 1, 1], [], []>} : vector<8x128xf32>, vector<128x32xf32>, vector<8x32xf32> -> vector<8x32xf32>
      %c0_40 = arith.constant 0 : index
      %c0_41 = arith.constant 0 : index
      %49 = vector.load %arg7[%c0_40, %c0_41] : memref<1x32xf32, #tpu.memory_space<vmem>>, vector<1x32xf32>
      %50 = vector.broadcast %49 : vector<1x32xf32> to vector<8x32xf32>
      %51 = arith.addf %48, %50 : vector<8x32xf32>
      %52 = vector.extract_strided_slice %51 {offsets = [0, 0], sizes = [8, 16], strides = [1, 1]} : vector<8x32xf32> to vector<8x16xf32>
      %53 = vector.extract_strided_slice %51 {offsets = [0, 16], sizes = [8, 16], strides = [1, 1]} : vector<8x32xf32> to vector<8x16xf32>
      %54 = math.exp %53 : vector<8x16xf32>
      %cst_42 = arith.constant 1.000000e+00 : f32
      %55 = vector.broadcast %cst_42 : f32 to vector<8x16xf32>
      %56 = arith.subf %55, %54 : vector<8x16xf32>
      %57 = arith.mulf %52, %52 : vector<8x16xf32>
      %58 = arith.subf %56, %57 : vector<8x16xf32>
      %59 = arith.addf %58, %53 : vector<8x16xf32>
      %cst_43 = arith.constant dense<0.000000e+00> : vector<8xf32>
      %60 = vector.multi_reduction <add>, %59, %cst_43 [1] : vector<8x16xf32> to vector<8xf32>
      %61 = vector.shape_cast %60 : vector<8xf32> to vector<8x1xf32>
      %cst_44 = arith.constant -5.000000e-01 : f32
      %62 = vector.broadcast %cst_44 : f32 to vector<8x1xf32>
      %63 = arith.mulf %62, %61 : vector<8x1xf32>
      %c0_45 = arith.constant 0 : index
      %c0_46 = arith.constant 0 : index
      %64 = vector.load %arg10[%c0_45, %c0_46] : memref<8x1xf32, #tpu.memory_space<vmem>>, vector<8x1xf32>
      tpu.vector_store %arg10[%c0_45, %c0_46], %63 {strides = array<i32>} : memref<8x1xf32, #tpu.memory_space<vmem>>, vector<8x1xf32>,
      %cst_47 = arith.constant dense<0xFF800000> : vector<8xf32>
      %65 = vector.multi_reduction <maximumf>, %52, %cst_47 [1] : vector<8x16xf32> to vector<8xf32>
      %66 = vector.shape_cast %65 : vector<8xf32> to vector<8x1xf32>
      %67 = vector.broadcast %66 : vector<8x1xf32> to vector<8x16xf32>
      %68 = arith.subf %52, %67 : vector<8x16xf32>
      %69 = math.exp %68 : vector<8x16xf32>
      %cst_48 = arith.constant dense<0.000000e+00> : vector<8xf32>
      %70 = vector.multi_reduction <add>, %69, %cst_48 [1] : vector<8x16xf32> to vector<8xf32>
      %71 = vector.shape_cast %70 : vector<8xf32> to vector<8x1xf32>
      %72 = vector.broadcast %71 : vector<8x1xf32> to vector<8x16xf32>
      %73 = arith.divf %69, %72 : vector<8x16xf32>
      %c0_49 = arith.constant 0 : index
      %c0_50 = arith.constant 0 : index
      %74 = vector.load %arg11[%c0_49, %c0_50] : memref<8x16xf32, #tpu.memory_space<vmem>>, vector<8x16xf32>
      tpu.vector_store %arg11[%c0_49, %c0_50], %73 {strides = array<i32>} : memref<8x16xf32, #tpu.memory_space<vmem>>, vector<8x16xf32>,
      %c0_51 = arith.constant 0 : index
      %c0_52 = arith.constant 0 : index
      %75 = vector.load %arg15[%c0_51, %c0_52] : memref<16x1xf32, #tpu.memory_space<vmem>>, vector<16x1xf32>
      %c0_53 = arith.constant 0 : index
      %c0_54 = arith.constant 0 : index
      %76 = vector.load %arg12[%c0_53, %c0_54] : memref<16x1xf32, #tpu.memory_space<vmem>>, vector<16x1xf32>
      tpu.vector_store %arg12[%c0_53, %c0_54], %75 {strides = array<i32>} : memref<16x1xf32, #tpu.memory_space<vmem>>, vector<16x1xf32>,
      %c0_55 = arith.constant 0 : index
      %c0_56 = arith.constant 0 : index
      %77 = vector.load %arg16[%c0_55, %c0_56] : memref<16x1xf32, #tpu.memory_space<vmem>>, vector<16x1xf32>
      %c0_57 = arith.constant 0 : index
      %c0_58 = arith.constant 0 : index
      %78 = vector.load %arg13[%c0_57, %c0_58] : memref<16x1xf32, #tpu.memory_space<vmem>>, vector<16x1xf32>
      tpu.vector_store %arg13[%c0_57, %c0_58], %77 {strides = array<i32>} : memref<16x1xf32, #tpu.memory_space<vmem>>, vector<16x1xf32>,
    } else {
    }
    return
  }
  func.func @transform_0(%arg0: i32) -> (i32, i32) {
    %c0_i32 = arith.constant 0 : i32
    %c0_i32_0 = arith.constant 0 : i32
    return %c0_i32, %arg0 : i32, i32
  }
  func.func @transform_1(%arg0: i32) -> (i32, i32) {
    %c0_i32 = arith.constant 0 : i32
    %c0_i32_0 = arith.constant 0 : i32
    return %arg0, %c0_i32 : i32, i32
  }
  func.func @transform_2(%arg0: i32) -> (i32, i32) {
    %c0_i32 = arith.constant 0 : i32
    %c0_i32_0 = arith.constant 0 : i32
    %c0_i32_1 = arith.constant 0 : i32
    return %c0_i32, %c0_i32_0 : i32, i32
  }
  func.func @transform_3(%arg0: i32) -> (i32, i32) {
    %c0_i32 = arith.constant 0 : i32
    %c0_i32_0 = arith.constant 0 : i32
    %c0_i32_1 = arith.constant 0 : i32
    return %c0_i32, %c0_i32_0 : i32, i32
  }
  func.func @transform_4(%arg0: i32) -> (i32, i32) {
    %c0_i32 = arith.constant 0 : i32
    %c0_i32_0 = arith.constant 0 : i32
    %c0_i32_1 = arith.constant 0 : i32
    return %c0_i32, %c0_i32_0 : i32, i32
  }
  func.func @transform_5(%arg0: i32) -> (i32, i32) {
    %c0_i32 = arith.constant 0 : i32
    %c0_i32_0 = arith.constant 0 : i32
    %c0_i32_1 = arith.constant 0 : i32
    return %c0_i32, %c0_i32_0 : i32, i32
  }
  func.func @transform_6(%arg0: i32) -> (i32, i32) {
    %c0_i32 = arith.constant 0 : i32
    %c0_i32_0 = arith.constant 0 : i32
    %c0_i32_1 = arith.constant 0 : i32
    return %c0_i32, %c0_i32_0 : i32, i32
  }
  func.func @transform_7(%arg0: i32) -> (i32, i32) {
    %c0_i32 = arith.constant 0 : i32
    %c0_i32_0 = arith.constant 0 : i32
    %c0_i32_1 = arith.constant 0 : i32
    return %c0_i32, %c0_i32_0 : i32, i32
  }
  func.func @transform_8(%arg0: i32) -> (i32, i32) {
    %c0_i32 = arith.constant 0 : i32
    %c0_i32_0 = arith.constant 0 : i32
    return %c0_i32, %arg0 : i32, i32
  }
  func.func @transform_9(%arg0: i32) -> (i32, i32) {
    %c0_i32 = arith.constant 0 : i32
    %c0_i32_0 = arith.constant 0 : i32
    %c0_i32_1 = arith.constant 0 : i32
    return %c0_i32, %c0_i32_0 : i32, i32
  }
  func.func @transform_10(%arg0: i32) -> (i32, i32) {
    %c0_i32 = arith.constant 0 : i32
    %c0_i32_0 = arith.constant 0 : i32
    %c0_i32_1 = arith.constant 0 : i32
    return %c0_i32, %c0_i32_0 : i32, i32
  }
  func.func @transform_11(%arg0: i32) -> (i32, i32) {
    %c0_i32 = arith.constant 0 : i32
    %c0_i32_0 = arith.constant 0 : i32
    %c0_i32_1 = arith.constant 0 : i32
    return %c0_i32, %c0_i32_0 : i32, i32
  }
  func.func @transform_12(%arg0: i32) -> (i32, i32) {
    %c0_i32 = arith.constant 0 : i32
    %c0_i32_0 = arith.constant 0 : i32
    %c0_i32_1 = arith.constant 0 : i32
    return %c0_i32, %c0_i32_0 : i32, i32
  }
}

module attributes {stable_mosaic.version = 11 : i64} {
  func.func @_decode_kernel(%arg0: i32, %arg1: memref<8x16xf32, #tpu.memory_space<vmem>>, %arg2: memref<16x1xf32, #tpu.memory_space<vmem>>, %arg3: memref<16x1xf32, #tpu.memory_space<vmem>>, %arg4: memref<16x64xbf16, #tpu.memory_space<vmem>>, %arg5: memref<64x256xbf16, #tpu.memory_space<vmem>>, %arg6: memref<8x256xf32, #tpu.memory_space<vmem>>) attributes {dimension_semantics = [#tpu.dimension_semantics<parallel>], iteration_bounds = array<i64: 2>, scalar_prefetch = 0 : i64, scratch_operands = 0 : i64, tpu.core_type = #tpu.core_type<tc>, window_params = [{pipeline_mode = #tpu.pipeline_mode<synchronous>, transform_indices = @transform_0, window_bounds = array<i64: 8, 16>}, {pipeline_mode = #tpu.pipeline_mode<synchronous>, transform_indices = @transform_1, window_bounds = array<i64: 16, 1>}, {pipeline_mode = #tpu.pipeline_mode<synchronous>, transform_indices = @transform_2, window_bounds = array<i64: 16, 1>}, {pipeline_mode = #tpu.pipeline_mode<synchronous>, transform_indices = @transform_3, window_bounds = array<i64: 16, 64>}, {transform_indices = @transform_4, window_bounds = array<i64: 64, 256>}, {transform_indices = @transform_5, window_bounds = array<i64: 8, 256>}]} {
    %c0 = arith.constant 0 : index
    %c0_0 = arith.constant 0 : index
    %0 = vector.load %arg4[%c0, %c0_0] : memref<16x64xbf16, #tpu.memory_space<vmem>>, vector<16x64xbf16>
    %c0_1 = arith.constant 0 : index
    %c0_2 = arith.constant 0 : index
    %1 = vector.load %arg5[%c0_1, %c0_2] : memref<64x256xbf16, #tpu.memory_space<vmem>>, vector<64x256xbf16>
    %cst = arith.constant dense<0.000000e+00> : vector<16x256xf32>
    %2 = tpu.matmul %0, %1, %cst {dimension_numbers = #tpu.dot_dimension_numbers<[1], [0], [0], [1], [0, 0, 1, 1], [], []>} : vector<16x64xbf16>, vector<64x256xbf16>, vector<16x256xf32> -> vector<16x256xf32>
    %c0_3 = arith.constant 0 : index
    %c0_4 = arith.constant 0 : index
    %3 = vector.load %arg2[%c0_3, %c0_4] : memref<16x1xf32, #tpu.memory_space<vmem>>, vector<16x1xf32>
    %4 = vector.broadcast %3 : vector<16x1xf32> to vector<16x256xf32>
    %5 = arith.subf %2, %4 : vector<16x256xf32>
    %6 = math.exp %5 : vector<16x256xf32>
    %c0_5 = arith.constant 0 : index
    %c0_6 = arith.constant 0 : index
    %7 = vector.load %arg3[%c0_5, %c0_6] : memref<16x1xf32, #tpu.memory_space<vmem>>, vector<16x1xf32>
    %8 = vector.broadcast %7 : vector<16x1xf32> to vector<16x256xf32>
    %9 = arith.divf %6, %8 : vector<16x256xf32>
    %c0_7 = arith.constant 0 : index
    %c0_8 = arith.constant 0 : index
    %10 = vector.load %arg1[%c0_7, %c0_8] : memref<8x16xf32, #tpu.memory_space<vmem>>, vector<8x16xf32>
    %cst_9 = arith.constant dense<0.000000e+00> : vector<8x256xf32>
    %11 = tpu.matmul %10, %9, %cst_9 {dimension_numbers = #tpu.dot_dimension_numbers<[1], [0], [0], [1], [0, 0, 1, 1], [], []>} : vector<8x16xf32>, vector<16x256xf32>, vector<8x256xf32> -> vector<8x256xf32>
    %c0_10 = arith.constant 0 : index
    %c0_11 = arith.constant 0 : index
    %12 = vector.load %arg6[%c0_10, %c0_11] : memref<8x256xf32, #tpu.memory_space<vmem>>, vector<8x256xf32>
    tpu.vector_store %arg6[%c0_10, %c0_11], %11 {strides = array<i32>} : memref<8x256xf32, #tpu.memory_space<vmem>>, vector<8x256xf32>,
    return
  }
  func.func @transform_0(%arg0: i32) -> (i32, i32) {
    %c0_i32 = arith.constant 0 : i32
    %c0_i32_0 = arith.constant 0 : i32
    %c0_i32_1 = arith.constant 0 : i32
    return %c0_i32, %c0_i32_0 : i32, i32
  }
  func.func @transform_1(%arg0: i32) -> (i32, i32) {
    %c0_i32 = arith.constant 0 : i32
    %c0_i32_0 = arith.constant 0 : i32
    %c0_i32_1 = arith.constant 0 : i32
    return %c0_i32, %c0_i32_0 : i32, i32
  }
  func.func @transform_2(%arg0: i32) -> (i32, i32) {
    %c0_i32 = arith.constant 0 : i32
    %c0_i32_0 = arith.constant 0 : i32
    %c0_i32_1 = arith.constant 0 : i32
    return %c0_i32, %c0_i32_0 : i32, i32
  }
  func.func @transform_3(%arg0: i32) -> (i32, i32) {
    %c0_i32 = arith.constant 0 : i32
    %c0_i32_0 = arith.constant 0 : i32
    %c0_i32_1 = arith.constant 0 : i32
    return %c0_i32, %c0_i32_0 : i32, i32
  }
  func.func @transform_4(%arg0: i32) -> (i32, i32) {
    %c0_i32 = arith.constant 0 : i32
    %c0_i32_0 = arith.constant 0 : i32
    return %c0_i32, %arg0 : i32, i32
  }
  func.func @transform_5(%arg0: i32) -> (i32, i32) {
    %c0_i32 = arith.constant 0 : i32
    %c0_i32_0 = arith.constant 0 : i32
    return %c0_i32, %arg0 : i32, i32
  }
}

</mosaic_0001>

<bundles_post_ra>
// kernel: neg.1
= control target key start
LH: loop header
LB: loop body
LE: loop exit
PB: predicated region body
PF: predicated region fallthrough
CT: control target
= control target key end

     0   :  { %2 = vsyncpa [#allocation1], 0  ;;  %s59_s0 = inlined_call_operand.vmem [shape: f32[8], index: 0, kind: input, shape index: {}]   ;;  %s60_s1 = inlined_call_operand.hbm [shape: f32[8], index: 1, kind: output, shape index: {}]  }
   0x1   :  { %v3_v0 = vld [vmem:[%s59_s0] sm:$0x1]  ;;  %s42_s0 = smov [#allocation0]  }
   0x2   :  { %v6_v1 = vxor.u32 2147483648, %v3_v0  ;;  %s13_s8 = sshll.u32 %s42_s0, 4  ;;  %s14_s8 = int_to_ptr.vmem [resolvable:$true] %s13_s8 }
   0x3   :  { %s20_s9 = scalar_lea.vmem %s14_s8, 16  ;;  %s24_s10 = scalar_lea.vmem %s14_s8, 32 }
   0x4   :  { %8 = vst [vmem:[#allocation0] sm:$0x1] %v6_v1  ;;  %p21_p0 = scmp.ne.s32.totalorder %s14_s8, %s20_s9  ;;  %p25_p1 = scmp.lt.s32.totalorder %s14_s8, %s14_s8 }
   0x5   :  { %p26_p2 = scmp.lt.s32.totalorder %s24_s10, %s20_s9 }
   0x7   :  { %p27_p3 = por %p26_p2, %p25_p1 }
   0x9   :  { %p28_p4 = pnand %p27_p3, %p21_p0 }
   0xb   :  { %31 = shalt.err (!%p28_p4)
}
   0xc   :  { %16 = dma.vmem_to_hbm [thread:$0]  %s14_s8, 16, %s60_s1, [#allocation1]  }
   0xd   :  { %40 = dma.done.wait [#allocation1], 16  }
   0xe   :  { %41 = vsyncadd [#allocation1], 4294967280 }
   0xf   :  { %18 = vsyncpa [#allocation1], 1 }

// kernel: etm_forward.3
= control target key start
LH: loop header
LB: loop body
LE: loop exit
PB: predicated region body
PF: predicated region fallthrough
CT: control target
= control target key end

     0   :  { %10 = vsyncpa [#allocation4], 0  ;;  %s903_s0 = inlined_call_operand.vmem [shape: f32[8,16], index: 0, kind: input, shape index: {}]   ;;  %s904_s1 = inlined_call_operand.vmem [shape: f32[16,1], index: 1, kind: input, shape index: {}]   ;;  %s905_s2 = inlined_call_operand.vmem [shape: f32[16,1], index: 2, kind: input, shape index: {}]   ;;  %s906_s3 = inlined_call_operand.vmem [shape: bf16[16,64], index: 3, kind: input, shape index: {}]   ;;  %s907_s4 = inlined_call_operand.vmem [shape: bf16[64,512], index: 4, kind: input, shape index: {}]   ;;  %s908_s5 = inlined_call_operand.hbm [shape: f32[8,512], index: 5, kind: output, shape index: {}]  }
   0x1   :  { %12 = vsyncpa [#allocation4 + $0x1], 0  ;;  %s782_s18 = smov 0   ;;  %s784_s19 = smov 0  }
   0x2   :  { %s786_s20 = smov 0   ;;  %s788_s21 = smov 0  }
   0x3 LB: > { %s591_s22 = sadd.s32 4294967295, %s747_s21   ;;  %s592_s23 = sadd.s32 4294967294, %s747_s21   ;;  %s747_s21 = sphi %s788_s21, %s916_s21   ;;  %s743_s20 = sphi %s786_s20, %s915_s20   ;;  %s739_s19 = sphi %s784_s19, %s914_s19   ;;  %s735_s18 = sphi %s782_s18, %s913_s18  }
   0x4   : > { %s805_s24 = sadd.s32 1, %s747_s21   ;;  %s109_s25 = sadd.s32 1, %s743_s20 }
   0x5   : > { %s106_s26 = ssub.s32 %s747_s21, %s805_s24  ;;  %p116_p0 = scmp.ne.s32.totalorder %s743_s20, %s739_s19 }
   0x6   : > { %p107_p1 = scmp.eq.s32.totalorder %s106_s26, 0  ;;  %p117_p2 = scmp.eq.s32.totalorder %s747_s21, 0 }
   0x7   : > { %p146_p3 = scmp.eq.s32.totalorder %s591_s22, 1  ;;  %p151_p4 = scmp.ne.s32.totalorder %s739_s19, %s735_s18 }
   0x8   : > { %s818_s27 = scalar_select %p107_p1, %s743_s20, %s109_s25  }
   0x9   : > { %p118_p5 = por %p117_p2, %p116_p0  ;;  %p820_p6 = por %p146_p3, %p116_p0 }
   0xa   : > { %p152_p7 = scmp.eq.s32.totalorder %s592_s23, 1  ;;  %p909_p9 = scmp.ge.s32.totalorder %s747_s21, 2 }
   0xc   : > { %p824_p8 = por %p152_p7, %p151_p4  ;;  %180 = sbr.rel (%p909_p9) target bundleno = 25 (0x19), region = 32 }
  0x11   : > { %183 = sbr.rel (!%p118_p5) target bundleno = 25 (0x19), region = 36  ;;  %s185_s30 = sand.u32 (%p118_p5), 1, %s743_s20  }
  0x12   : > { %s617_s6 = sshll.u32 (%p118_p5), %s747_s21, 3  ;;  %s595_s7 = sshll.u32 (%p118_p5), %s185_s30, 6 }
  0x13   : > { %s190_s10 = scalar_lea.vmem (%p118_p5), %s907_s4, %s617_s6  ;;  %s187_s11 = scalar_lea.vmem (%p118_p5), [#allocation2], %s595_s7 }
  0x14   : > { %v233_v0 = vld [vmem:[%s190_s10] sm:$0xff] (%p118_p5)  ;;  %v235_v1 = vld [vmem:[%s190_s10 + $0x10] sm:$0xff] (%p118_p5) }
  0x15   : > { %v237_v2 = vld [vmem:[%s190_s10 + $0x20] sm:$0xff] (%p118_p5)  ;;  %234 = vst [vmem:[%s187_s11] sm:$0xff] (%p118_p5), %v233_v0  ;;  %236 = vst [vmem:[%s187_s11 + $0x8] sm:$0xff] (%p118_p5), %v235_v1  ;;  %v239_v3 = vld [vmem:[%s190_s10 + $0x30] sm:$0xff] (%p118_p5) }
  0x16   : > { %238 = vst [vmem:[%s187_s11 + $0x10] sm:$0xff] %v237_v2  ;;  %v241_v4 = vld [vmem:[%s190_s10 + $0x40] sm:$0xff]  ;;  %v243_v5 = vld [vmem:[%s190_s10 + $0x50] sm:$0xff]  ;;  %240 = vst [vmem:[%s187_s11 + $0x18] sm:$0xff] %v239_v3 }
  0x17   : > { %242 = vst [vmem:[%s187_s11 + $0x20] sm:$0xff] %v241_v4  ;;  %244 = vst [vmem:[%s187_s11 + $0x28] sm:$0xff] %v243_v5  ;;  %v245_v6 = vld [vmem:[%s190_s10 + $0x60] sm:$0xff]  ;;  %v247_v7 = vld [vmem:[%s190_s10 + $0x70] sm:$0xff] }
  0x18   : > { %246 = vst [vmem:[%s187_s11 + $0x30] sm:$0xff] %v245_v6  ;;  %248 = vst [vmem:[%s187_s11 + $0x38] sm:$0xff] %v247_v7 }
  0x19 PF: > { %p598_p10 = scmp.ge.s32.totalorder %s747_s21, 1  ;;  %p253_p11 = scmp.lt.s32.totalorder %s747_s21, 3 }
  0x1b   : > { %p254_p12 = pnand %p598_p10, %p253_p11 }
  0x1c   : > { %s839_s12 = sand.u32 (!%p254_p12), 1, %s739_s19   ;;  %s618_s15 = sshll.u32 (!%p254_p12), %s591_s22, 8 }
  0x1d   : > { %257 = sbr.rel (%p254_p12) target bundleno = 484 (0x1e4), region = 74  ;;  %s599_s13 = sshll.u32 (!%p254_p12), %s839_s12, 6 }
  0x1e   : > { %s262_s6 = scalar_lea.vmem (!%p254_p12), [#allocation2], %s599_s13  ;;  %s600_s11 = sshll.u32 (!%p254_p12), %s839_s12, 4 }
  0x1f   : > { %s286_s13 = scalar_lea.vmem (!%p254_p12), [#allocation3], %s600_s11  ;;  %s525_s23 = scalar_lea.hbm (!%p254_p12), %s908_s5, %s618_s15 }
  0x20   : > { %s527_s14 = sshll.u32 (!%p254_p12), %s286_s13, 4  ;;  %s513_s25 = scalar_lea.sflag (!%p254_p12), [#allocation4], %s839_s12  ;;  %s863_s14 = int_to_ptr.vmem [resolvable:$true] %s527_s14 }
  0x21   : > { %s687_s26 = scalar_lea.vmem (!%p254_p12), %s863_s14, 256  ;;  %s751_s22 = smov (!%p254_p12), [#allocation3]  }
  0x22   : > { %v749_v8 = vmov 0   ;;  %v393_v9 = vld [vmem:[%s904_s1 + $0x8] sm:$0xff]  ;;  %v392_v11 = vld [vmem:[%s904_s1] sm:$0xff]  ;;  %v662_v13 = vld [vmem:[%s262_s6 + $0x34] ss:$8 sps:$4 sm:$0xff]   ;;  %vm345_vm0 = vcmask 523264   ;;  %p688_p13 = scmp.ne.s32.totalorder %s863_s14, %s687_s26 }
  0x23   : > { %381 = vmatprep.mubr.bf16.mxu0 %v749_v8  ;;  %660 = vset.pattern.permute.xlu0 %v749_v8  ;;  %v417_v10 = vld [vmem:[%s905_s2 + $0x8] sm:$0xff]  ;;  %v416_v12 = vld [vmem:[%s905_s2] sm:$0xff]  ;;  %v664_v14 = vld [vmem:[%s262_s6 + $0x30] ss:$8 sps:$4 sm:$0xff]   ;;  %v750_v22 = vmov 0.0   ;;  %vm435_vm1 = vcmask 130048  }
  0x24   : > { %401 = vperm.xlu0 %660, %v393_v9   ;;  %661 = vset.pattern.permute.xlu1 %v749_v8  ;;  %v665_v15 = vld [vmem:[%s262_s6 + $0x24] ss:$8 sps:$4 sm:$0xff]   ;;  %v667_v16 = vld [vmem:[%s262_s6 + $0x20] ss:$8 sps:$4 sm:$0xff]   ;;  %v668_v17 = vld [vmem:[%s262_s6 + $0x14] ss:$8 sps:$4 sm:$0xff]   ;;  %p689_p0 = pnand %p688_p13, %p820_p6 }
  0x25   : > { %425 = vperm.xlu1 %661, %v417_v10   ;;  %357 = vmatprep.subr.bf16.mxu0 %v662_v13  ;;  %v670_v18 = vld [vmem:[%s262_s6 + $0x10] ss:$8 sps:$4 sm:$0xff]   ;;  %v671_v19 = vld [vmem:[%s262_s6 + $0x4] ss:$8 sps:$4 sm:$0xff]   ;;  %v673_v20 = vld [vmem:[%s262_s6] ss:$8 sps:$4 sm:$0xff]  }
  0x26   : > { %358 = vmatpush1.bf16.msra.mxu0 %v664_v14  ;;  %v674_v21 = vld [vmem:[%s906_s3] sm:$0xff]   ;;  %503 = vmatprep.mubr.f32.mxu1 %v750_v22  ;;  %p690_p1 = pneg %p689_p0  ;;  %s691_s30 = sshll.u32 %s751_s22, 4  ;;  %s692_s30 = int_to_ptr.vmem [resolvable:$false] %s691_s30 }
  0x27   : > { %359 = vmatprep.subr.bf16.mxu0 %v665_v15  ;;  %v434_v49 = vld [vmem:[%s903_s0] sm:$0xff]  ;;  %s693_s6 = scalar_lea.vmem %s692_s30, 512  ;;  %p694_p2 = scmp.lt.s32.totalorder %s863_s14, %s692_s30 }
  0x28   : > { %396 = vperm.xlu0 %660, %v392_v11   ;;  %p695_p3 = scmp.lt.s32.totalorder %s693_s6, %s687_s26 }
  0x29   : > { %420 = vperm.xlu1 %661, %v416_v12  }
  0x2a   : > { %360 = vmatpush1.bf16.msra.mxu0 %v667_v16  ;;  %p696_p4 = por %p695_p3, %p694_p2 }
  0x2b   : > { %361 = vmatprep.subr.bf16.mxu0 %v668_v17 }
  0x2c   : > { %p697_p5 = pnand %p696_p4, %p690_p1 }
  0x2e   : > { %362 = vmatpush1.bf16.msra.mxu0 %v670_v18 }
  0x2f   : > { %363 = vmatprep.subr.bf16.mxu0 %v671_v19 }
  0x32   : > { %364 = vmatpush1.bf16.msra.mxu0 %v673_v20 }
  0x35   : > { %610 = vmatmul.mubr.msk.bf16.vlgmr.msra.gmra.mxu0 %vm345_vm0, %v674_v21 }
  0x9f   : > { %v402_v23 = vpop.permute.xlu0 %401 }
  0xa0   : > { %v426_v24 = vpop.permute.xlu1 %425 }
  0xa1   : > { %675 = vrcp.f32 %v426_v24 }
  0xa3   : > { %v397_v26 = vpop.permute.xlu0 %396 }
  0xa4   : > { %v421_v32 = vpop.permute.xlu1 %420 }
  0xa5   : > { %677 = vrcp.f32 %v421_v32 }
  0xae   : > { %v676_v39 = vpop.eup %675 }
  0xb2   : > { %v678_v40 = vpop.eup %677 }
  0xf5   : > { %v383_v25 = vpop.f32.mrf.mxu0 }
  0xf6   : > { %v404_v29 = vsub.f32 %v383_v25, %v397_v26 }
  0xf7   : > { %v385_v27 = vpop.f32.mrf.mxu0 }
  0xf8   : > { %v405_v28 = vsub.f32 %v385_v27, %v397_v26  ;;  %v408_v37 = vmul.f32 1.442695, %v404_v29 }
  0xf9   : > { %v387_v30 = vpop.f32.mrf.mxu0 }
  0xfa   : > { %v410_v31 = vmul.f32 1.442695, %v405_v28  ;;  %v406_v33 = vsub.f32 %v387_v30, %v402_v23 }
  0xfb   : > { %v389_v34 = vpop.f32.mrf.mxu0 }
  0xfc   : > { %v412_v35 = vmul.f32 1.442695, %v406_v33  ;;  %v407_v36 = vsub.f32 %v389_v34, %v402_v23  ;;  %679 = vpow2.f32 %v410_v31 }
  0xfe   : > { %v414_v38 = vmul.f32 1.442695, %v407_v36  ;;  %681 = vpow2.f32 %v412_v35 }
 0x100   : > { %683 = vpow2.f32 %v414_v38 }
 0x101   : > { %685 = vpow2.f32 %v408_v37 }
 0x109   : > { %v680_v41 = vpop.eup %679 }
 0x10a   : > { %v430_v47 = vmul.f32 %v680_v41, %v678_v40 }
 0x10b   : > { %v682_v42 = vpop.eup %681 }
 0x10c   : > { %v432_v46 = vmul.f32 %v682_v42, %v676_v39 }
 0x10d   : > { %v684_v43 = vpop.eup %683 }
 0x10e   : > { %v686_v44 = vpop.eup %685  ;;  %v433_v45 = vmul.f32 %v684_v43, %v676_v39 }
 0x10f   : > { %v429_v48 = vmul.f32 %v686_v44, %v678_v40 }
 0x110   : > { %467 = vmatprep.subr.mxu1 %v433_v45 }
 0x111   : > { %468 = vmatpush1.msra.mxu1 %v432_v46 }
 0x112   : > { %469 = vmatprep.subr.mxu1 %v430_v47 }
 0x113   : > { %470 = vmatpush1.msra.mxu1 %v429_v48 }
 0x114   : > { %611 = vmatmul.mubr.msk.f32.vlgmr.msra.gmra.mxu1 %vm435_vm1, %v434_v49 }
 0x1d4   : > { %v505_v50 = vpop.f32.mrf.mxu1 }
 0x1d5   : > { %510 = vst [vmem:[%s286_s13] sm:$0xff] %v505_v50 }
 0x1d6   : > { %v507_v51 = vpop.f32.mrf.mxu1 }
 0x1d7   : > { %511 = vst [vmem:[%s286_s13 + $0x8] sm:$0xff] %v507_v51 }
 0x1d8   : > { %700 = shalt.err (!%p697_p5)
}
 0x1d9   : > { %s701_s7 = scalar_lea.hbm %s525_s23, 256  ;;  %s705_s9 = scalar_lea.hbm %s908_s5, 512 }
 0x1da   : > { %p702_p7 = scmp.ne.s32.totalorder %s525_s23, %s701_s7  ;;  %p706_p12 = scmp.lt.s32.totalorder %s525_s23, %s908_s5 }
 0x1db   : > { %p707_p13 = scmp.lt.s32.totalorder %s705_s9, %s701_s7 }
 0x1dc   : > { %p703_p10 = pnand %p702_p7, %p820_p6 }
 0x1dd   : > { %p708_p0 = por %p707_p13, %p706_p12 }
 0x1de   : > { %p704_p11 = pneg %p703_p10 }
 0x1e0   : > { %p709_p9 = pnand %p708_p0, %p704_p11 }
 0x1e2   : > { %712 = shalt.err (!%p709_p9)
}
 0x1e3   : > { %619 = dma.vmem_to_hbm [thread:$0]  (%p820_p6), %s863_s14, 256, %s525_s23, %s513_s25  }
 0x1e4 PF: > { %s539_s13 = sand.u32 1, %s735_s18   ;;  %p912_p1 = scmp.ge.s32.totalorder %s747_s21, 2 }
 0x1e5   : > { %s540_s15 = scalar_lea.sflag [#allocation4], %s539_s13 }
 0x1e6   : > { %p622_p2 = pnand %p912_p1, %p824_p8 }
 0x1e8   : > { %p623_p3 = pneg %p622_p2 }
 0x1ea   : > { %730 = dma.done.wait (%p623_p3), %s540_s15, 256  }
 0x1eb   : > { %732 = vsyncadd (%p623_p3), %s540_s15, 4294967040  ;;  %p15_p9 = scmp.ge.s32.totalorder %s805_s24, 4   ;;  %s913_s18 = smov %s739_s19 }
 0x1ec   : > { %s914_s19 = smov %s743_s20  ;;  %s915_s20 = smov %s818_s27 }
 0x1ed   : > { %s916_s21 = smov %s805_s24  ;;  %17 = sbr.rel (!%p15_p9) target bundleno = 3 (0x3), region = 118 }
 0x1f2   :  { %545 = vsyncpa [#allocation4], 1 }
 0x1f3   :  { %547 = vsyncpa [#allocation4 + $0x1], 1 }

// kernel: etm_forward.2
= control target key start
LH: loop header
LB: loop body
LE: loop exit
PB: predicated region body
PF: predicated region fallthrough
CT: control target
= control target key end

     0   :  { %s1967_s0 = inlined_call_operand.vmem [shape: f32[8,512], index: 0, kind: input, shape index: {}]   ;;  %s1968_s1 = inlined_call_operand.hbm [shape: bf16[512,128], index: 1, kind: input, shape index: {}]   ;;  %s1969_s2 = inlined_call_operand.vmem [shape: f32[1,128], index: 2, kind: input, shape index: {}]   ;;  %s1970_s3 = inlined_call_operand.hbm [shape: bf16[128,128], index: 3, kind: input, shape index: {}]   ;;  %s1971_s4 = inlined_call_operand.vmem [shape: f32[1,128], index: 4, kind: input, shape index: {}]   ;;  %s1972_s5 = inlined_call_operand.vmem [shape: f32[128,32], index: 5, kind: input, shape index: {}]   ;;  %s1973_s6 = inlined_call_operand.vmem [shape: f32[1,32], index: 6, kind: input, shape index: {}]   ;;  %s1974_s7 = inlined_call_operand.vmem [shape: bf16[16,64], index: 7, kind: input, shape index: {}]   ;;  %s1975_s8 = inlined_call_operand.vmem [shape: bf16[64,512], index: 8, kind: input, shape index: {}]   ;;  %s1976_s9 = inlined_call_operand.vmem [shape: f32[8,1], index: 9, kind: output, shape index: {0}]   ;;  %s1977_s10 = inlined_call_operand.vmem [shape: f32[8,16], index: 10, kind: output, shape index: {1}]   ;;  %s1978_s11 = inlined_call_operand.vmem [shape: f32[16,1], index: 11, kind: output, shape index: {2}]   ;;  %s1979_s12 = inlined_call_operand.vmem [shape: f32[16,1], index: 12, kind: output, shape index: {3}]  }
   0x1   :  { %1985 = sst [smem:[#allocation15_spill]] %s1970_s3 }
   0x2   :  { %18 = vsyncpa [#allocation6], 0 }
   0x3   :  { %20 = vsyncpa [#allocation6 + $0x1], 0 }
   0x4   :  { %21 = vsyncpa [#allocation8], 0  ;;  %s1679_s21 = smov 0   ;;  %s1681_s22 = smov 0  }
   0x5   :  { %s1683_s23 = smov 0   ;;  %s1685_s24 = smov 0  }
   0x6 LB: > { %1986 = sst [smem:[#allocation12_spill]] %s1595_s23  ;;  %s1698_s25 = sadd.s32 4294967295, %s1599_s24   ;;  %s1599_s24 = sphi %s1685_s24, %s1997_s24   ;;  %s1595_s23 = sphi %s1683_s23, %s1999_s23   ;;  %s1591_s22 = sphi %s1681_s22, %s2001_s22   ;;  %s1587_s21 = sphi %s1679_s21, %s2000_s21  }
   0x7   : > { %s1701_s26 = sadd.s32 1, %s1599_s24   ;;  %s60_s28 = sadd.s32 1, %s1595_s23 }
   0x8   : > { %1987 = sst [smem:[#allocation13_spill]] %s1701_s26  ;;  %s57_s27 = ssub.s32 %s1599_s24, %s1701_s26 }
   0x9   : > { %p58_p0 = scmp.eq.s32.totalorder %s57_s27, 0  ;;  %p67_p1 = scmp.ne.s32.totalorder %s1595_s23, %s1591_s22 }
   0xa   : > { %p68_p2 = scmp.eq.s32.totalorder %s1599_s24, 0  ;;  %p73_p3 = scmp.ne.s32.totalorder %s1591_s22, %s1587_s21 }
   0xb   : > { %s1711_s29 = scalar_select %p58_p0, %s1595_s23, %s60_s28  }
   0xc   : > { %p1713_p4 = por %p68_p2, %p67_p1  ;;  %p1984_p5 = scmp.eq.s32.totalorder %s1698_s25, 0 }
   0xd   : > { %1988 = sst [smem:[#allocation14_spill]] %s1711_s29  ;;  %p1235_p6 = scmp.ge.s32.totalorder %s1599_s24, 1 }
   0xe   : > { %p320_p7 = scmp.lt.s32.totalorder %s1599_s24, 3  ;;  %p1722_p8 = por %p1984_p5, %p73_p3 }
   0xf   : > { %s1601_s15 = smov [#allocation7]  }
  0x10   : > { %s1990_s13 = scalar_select %p1722_p8, 1, 0 }
  0x11   : > { %p1727_p10 = pnand %p1235_p6, %p320_p7  ;;  %s335_s16 = sshll.u32 %s1601_s15, 4  ;;  %s336_s16 = int_to_ptr.vmem [resolvable:$true] %s335_s16 }
  0x12   : > { %s1520_s17 = scalar_lea.vmem %s336_s16, 1024  ;;  %p1528_p3 = scmp.lt.s32.totalorder %s336_s16, %s336_s16 }
  0x13   : > { %p1402_p11 = pneg %p1727_p10  ;;  %p1521_p0 = scmp.ne.s32.totalorder %s336_s16, %s1520_s17 }
  0x14   : > { %p1529_p8 = scmp.lt.s32.totalorder %s1520_s17, %s1520_s17 }
  0x15   : > { %p1403_p12 = pnand %p1402_p11, %p1984_p5 }
  0x16   : > { %p1530_p9 = por %p1529_p8, %p1528_p3 }
  0x17   : > { %p1511_p13 = pneg %p1403_p12 }
  0x19   : > { %p1523_p1 = pnand %p1521_p0, %p1511_p13 }
  0x1b   : > { %p1524_p2 = pneg %p1523_p1 }
  0x1d   : > { %p1531_p6 = pnand %p1530_p9, %p1524_p2 }
  0x1f   : > { %1534 = shalt.err (!%p1531_p6)
}
  0x20   : > { %s1602_s18 = smov 64   ;;  %s1603_s19 = smov 4  }
  0x21   : > { %s1992_s3 = sld [smem:[#allocation15_spill]]  ;;  %p1237_p7 = scmp.ge.s32.totalorder %s1599_s24, 2 }
  0x22   : > { %s1740_s27 = sand.u32 (!%p1237_p7), 1, %s1595_s23   ;;  %s1291_s28 = sshll.u32 (!%p1237_p7), %s1599_s24, 11 }
  0x23   : > { %357 = sbr.rel (%p1237_p7) target bundleno = 69 (0x45), region = 40  ;;  %s1238_s15 = sshll.u32 (!%p1237_p7), %s1740_s27, 7 }
  0x24   : > { %s1747_s26 = scalar_lea.hbm (!%p1237_p7), %s1968_s1, %s1291_s28  ;;  %s1539_s23 = scalar_lea.hbm (!%p1237_p7), %s1968_s1, 4096 }
  0x25   : > { %s1535_s20 = scalar_lea.hbm (!%p1237_p7), %s1747_s26, 2048 }
  0x26   : > { %p1536_p8 = scmp.ne.s32.totalorder (!%p1237_p7), %s1747_s26, %s1535_s20  ;;  %p1541_p13 = scmp.lt.s32.totalorder (!%p1237_p7), %s1539_s23, %s1535_s20 }
  0x27   : > { %1405 = dma.hbm_to_vmem [thread:$0]  (!%p1403_p12), %s1992_s3, 1024, %s336_s16, [#allocation8], %s1602_s18, %s1602_s18, %s1603_s19  }
  0x28   : > { %s374_s16 = scalar_lea.vmem [#allocation5], %s1238_s15  ;;  %s371_s19 = scalar_lea.sflag [#allocation6], %s1740_s27 }
  0x29   : > { %s381_s18 = sshll.u32 %s374_s16, 4  ;;  %p1537_p9 = pnand %p1536_p8, %p1713_p4  ;;  %s1749_s18 = int_to_ptr.vmem [resolvable:$true] %s381_s18 }
  0x2a   : > { %p1540_p12 = scmp.lt.s32.totalorder %s1747_s26, %s1968_s1 }
  0x2b   : > { %p1538_p11 = pneg %p1537_p9 }
  0x2c   : > { %p1542_p0 = por %p1541_p13, %p1540_p12 }
  0x2e   : > { %p1543_p1 = pnand %p1542_p0, %p1538_p11 }
  0x30   : > { %1546 = shalt.err (!%p1543_p1)
}
  0x31   : > { %s1547_s15 = scalar_lea.vmem %s1749_s18, 2048  ;;  %s1604_s17 = smov [#allocation5]  }
  0x32   : > { %p1548_p2 = scmp.ne.s32.totalorder %s1749_s18, %s1547_s15  ;;  %s1551_s3 = sshll.u32 %s1604_s17, 4  ;;  %s1552_s3 = int_to_ptr.vmem [resolvable:$false] %s1551_s3 }
  0x33   : > { %s1553_s16 = scalar_lea.vmem %s1552_s3, 4096  ;;  %p1554_p7 = scmp.lt.s32.totalorder %s1749_s18, %s1552_s3 }
  0x34   : > { %p1549_p3 = pnand %p1548_p2, %p1713_p4  ;;  %p1555_p8 = scmp.lt.s32.totalorder %s1553_s16, %s1547_s15 }
  0x36   : > { %p1550_p6 = pneg %p1549_p3  ;;  %p1556_p9 = por %p1555_p8, %p1554_p7 }
  0x38   : > { %p1557_p5 = pnand %p1556_p9, %p1550_p6 }
  0x3a   : > { %1560 = shalt.err (!%p1557_p5)
}
  0x3b   : > { %s1605_s23 = smov 64   ;;  %s1606_s20 = smov 4  }
  0x3c   : > { %1398 = dma.hbm_to_vmem [thread:$0]  (%p1713_p4), %s1747_s26, 2048, %s1749_s18, %s371_s19, %s1605_s23, %s1605_s23, %s1606_s20  }
  0x3d   : > { %390 = sbr.rel (!%p1713_p4) target bundleno = 69 (0x45), region = 52  ;;  %s1241_s21 = sshll.u32 (%p1713_p4), %s1740_s27, 6 }
  0x3e   : > { %s1292_s29 = sshll.u32 (%p1713_p4), %s1599_s24, 3  ;;  %s394_s3 = scalar_lea.vmem (%p1713_p4), [#allocation9], %s1241_s21 }
  0x3f   : > { %s397_s17 = scalar_lea.vmem (%p1713_p4), %s1975_s8, %s1292_s29 }
  0x40   : > { %v440_v0 = vld [vmem:[%s397_s17] sm:$0xff] (%p1713_p4)  ;;  %v442_v1 = vld [vmem:[%s397_s17 + $0x10] sm:$0xff] (%p1713_p4) }
  0x41   : > { %v444_v2 = vld [vmem:[%s397_s17 + $0x20] sm:$0xff] (%p1713_p4)  ;;  %441 = vst [vmem:[%s394_s3] sm:$0xff] (%p1713_p4), %v440_v0  ;;  %443 = vst [vmem:[%s394_s3 + $0x8] sm:$0xff] (%p1713_p4), %v442_v1  ;;  %v446_v3 = vld [vmem:[%s397_s17 + $0x30] sm:$0xff] (%p1713_p4) }
  0x42   : > { %445 = vst [vmem:[%s394_s3 + $0x10] sm:$0xff] %v444_v2  ;;  %v448_v4 = vld [vmem:[%s397_s17 + $0x40] sm:$0xff]  ;;  %v450_v5 = vld [vmem:[%s397_s17 + $0x50] sm:$0xff]  ;;  %447 = vst [vmem:[%s394_s3 + $0x18] sm:$0xff] %v446_v3 }
  0x43   : > { %449 = vst [vmem:[%s394_s3 + $0x20] sm:$0xff] %v448_v4  ;;  %451 = vst [vmem:[%s394_s3 + $0x28] sm:$0xff] %v450_v5  ;;  %v452_v6 = vld [vmem:[%s397_s17 + $0x60] sm:$0xff]  ;;  %v454_v7 = vld [vmem:[%s397_s17 + $0x70] sm:$0xff] }
  0x44   : > { %453 = vst [vmem:[%s394_s3 + $0x30] sm:$0xff] %v452_v6  ;;  %455 = vst [vmem:[%s394_s3 + $0x38] sm:$0xff] %v454_v7 }
  0x45 PF: > { %464 = sbr.rel (%p1727_p10) target bundleno = 1539 (0x603), region = 90  ;;  %s466_s24 = sand.u32 (!%p1727_p10), 1, %s1591_s22  }
  0x46   : > { %s1245_s26 = sshll.u32 (!%p1727_p10), %s466_s24, 7  ;;  %s467_s30 = scalar_lea.sflag (!%p1727_p10), [#allocation6], %s466_s24 }
  0x47   : > { %s1784_s27 = scalar_lea.vmem (!%p1727_p10), [#allocation5], %s1245_s26  ;;  %p1993_p4 = scmp.ne.s32.totalorder (!%p1727_p10), %s1990_s13, 0 }
  0x4a   : > { %1578 = dma.done.wait (%p1993_p4), %s467_s30, 2048  }
  0x4b   : > { %1580 = vsyncadd (%p1993_p4), %s467_s30, 4294965248  ;;  %p1994_p5 = scmp.eq.s32.totalorder %s1698_s25, 0 }
  0x4d   : > { %1582 = dma.done.wait (%p1994_p5), [#allocation8], 1024   ;;  %p1995_p11 = pmov %p1994_p5 }
  0x4e   : > { %s1247_s14 = sshll.u32 %s466_s24, 6  ;;  %s1248_s18 = sshll.u32 %s1698_s25, 1 }
  0x4f   : > { %1584 = vsyncadd (%p1995_p11), [#allocation8], 4294966272  ;;  %p527_p10 = scmp.lt.s32.totalorder %s1248_s18, 3  ;;  %s482_s21 = scalar_lea.vmem [#allocation9], %s1247_s14 }
  0x50   : > { %p1996_p12 = scmp.ne.s32.totalorder %s1698_s25, 0 }
  0x51   : > { %s2003_s18 = smov (!%p527_p10, %s1248_s18), 3 }
  0x52   : > { %s1249_s19 = sshll.u32 %s2003_s18, 3  ;;  %538 = sbr.rel (%p1996_p12) target bundleno = 91 (0x5b), region = 106 }
  0x53   : > { %s1798_s20 = scalar_lea.vmem %s1967_s0, %s1249_s19 }
  0x57   : > { %vm540_vm0 = vcmask 7168   ;;  %v1607_v8 = vmov 0.0   ;;  %v1608_v9 = vmov -inf  }
  0x58   : > { %539 = vst [vmem:[#allocation2] sm:$0xff] %v1607_v8  ;;  %541 = vst.msk [vmem:[#allocation3] sm:$0xff] %vm540_vm0, %v1608_v9 }
  0x59   : > { %542 = vst.msk [vmem:[#allocation3 + $0x8] sm:$0xff] %vm540_vm0, %v1608_v9  ;;  %543 = vst.msk [vmem:[#allocation4] sm:$0xff] %vm540_vm0, %v1607_v8 }
  0x5a   : > { %544 = vst.msk [vmem:[#allocation4 + $0x8] sm:$0xff] %vm540_vm0, %v1607_v8 }
  0x5b PF: > { %v1454_v10 = vld [vmem:[%s482_s21 + $0x34] ss:$8 sps:$4 sm:$0xff]   ;;  %v1456_v11 = vld [vmem:[%s482_s21 + $0x30] ss:$8 sps:$4 sm:$0xff]   ;;  %v1609_v12 = vmov 0   ;;  %vm775_vm1 = vcmask 523264  }
  0x5c   : > { %811 = vmatprep.mubr.bf16.mxu1 %v1609_v12  ;;  %1452 = vset.pattern.permute.xlu1 %v1609_v12  ;;  %v1457_v13 = vld [vmem:[%s482_s21 + $0x24] ss:$8 sps:$4 sm:$0xff]   ;;  %v1459_v14 = vld [vmem:[%s482_s21 + $0x20] ss:$8 sps:$4 sm:$0xff]   ;;  %v1460_v15 = vld [vmem:[%s482_s21 + $0x14] ss:$8 sps:$4 sm:$0xff]  }
  0x5d   : > { %787 = vmatprep.subr.bf16.mxu1 %v1454_v10  ;;  %1453 = vset.pattern.permute.xlu0 %v1609_v12  ;;  %v1462_v16 = vld [vmem:[%s482_s21 + $0x10] ss:$8 sps:$4 sm:$0xff]   ;;  %v1463_v17 = vld [vmem:[%s482_s21 + $0x4] ss:$8 sps:$4 sm:$0xff]   ;;  %v1465_v18 = vld [vmem:[%s482_s21] ss:$8 sps:$4 sm:$0xff]  }
  0x5e   : > { %788 = vmatpush1.bf16.msra.mxu1 %v1456_v11  ;;  %v1466_v19 = vld [vmem:[%s1974_s7] sm:$0xff]   ;;  %v1469_v28 = vld [vmem:[%s1784_s27 + $0x70] sm:$0xff]   ;;  %v1471_v30 = vld [vmem:[%s1784_s27 + $0x68] sm:$0xff]   ;;  %vm872_vm2 = vcmask 7168   ;;  %p1277_p13 = scmp.ne.s32.totalorder %s1698_s25, 1 }
  0x5f   : > { %789 = vmatprep.subr.bf16.mxu1 %v1457_v13  ;;  %v1467_v26 = vld [vmem:[%s1784_s27 + $0x78] sm:$0xff]   ;;  %v1470_v29 = vld [vmem:[%s1784_s27 + $0x30] sm:$0xff]   ;;  %v547_v31 = vld [vmem:[%s1798_s20 + $0x8] sm:$0xff]  ;;  %s1612_s15 = smov (!%p1277_p13), 16   ;;  %s1613_s17 = smov (!%p1277_p13), 112  }
  0x60   : > { %v1468_v27 = vld [vmem:[%s1784_s27 + $0x38] sm:$0xff]   ;;  %1293 = vmatprep.subr.bf16.mxu0 %v1467_v26  ;;  %v549_v32 = vpack.c.bf16 %v547_v31, %v547_v31  ;;  %v1472_v33 = vld [vmem:[%s1784_s27 + $0x28] sm:$0xff]   ;;  %v1473_v34 = vld [vmem:[%s1784_s27 + $0x60] sm:$0xff]  }
  0x61   : > { %1294 = vmatpush3.bf16.msra.mxu0 %v1468_v27  ;;  %v1474_v35 = vld [vmem:[%s1784_s27 + $0x20] sm:$0xff]   ;;  %v1475_v36 = vld [vmem:[%s1784_s27 + $0x58] sm:$0xff]   ;;  %v1477_v38 = vld [vmem:[%s1784_s27 + $0x50] sm:$0xff]  }
  0x62   : > { %790 = vmatpush1.bf16.msra.mxu1 %v1459_v14  ;;  %1295 = vmatprep.subr.bf16.mxu0 %v1469_v28  ;;  %v1476_v37 = vld [vmem:[%s1784_s27 + $0x18] sm:$0xff]   ;;  %v1478_v39 = vld [vmem:[%s1784_s27 + $0x10] sm:$0xff]   ;;  %v1479_v40 = vld [vmem:[%s1784_s27 + $0x48] sm:$0xff]  }
  0x63   : > { %791 = vmatprep.subr.bf16.mxu1 %v1460_v15  ;;  %710 = vmatprep.mubr.bf16.mxu0 %v549_v32  ;;  %v1480_v41 = vld [vmem:[%s1784_s27 + $0x8] sm:$0xff]   ;;  %v1481_v42 = vld [vmem:[%s1784_s27 + $0x40] sm:$0xff]   ;;  %v546_v44 = vld [vmem:[%s1798_s20] sm:$0xff] }
  0x64   : > { %v1482_v43 = vld [vmem:[%s1784_s27] sm:$0xff]   ;;  %v548_v45 = vpack.c.bf16 %v546_v44, %v546_v44  ;;  %v823_v49 = vld [vmem:[#allocation3 + $0x8] sm:$0xff]  ;;  %v545_v55 = vld [vmem:[#allocation2] sm:$0xff] }
  0x65   : > { %1296 = vmatpush3.bf16.msra.mxu0 %v1470_v29  ;;  %v822_v46 = vld [vmem:[#allocation3] sm:$0xff] }
  0x66   : > { %792 = vmatpush1.bf16.msra.mxu1 %v1462_v16  ;;  %1297 = vmatprep.subr.bf16.mxu0 %v1471_v30  ;;  %v832_v16 = vld [vmem:[#allocation4] sm:$0xff] }
  0x67   : > { %793 = vmatprep.subr.bf16.mxu1 %v1463_v17 }
  0x69   : > { %1298 = vmatpush3.bf16.msra.mxu0 %v1472_v33 }
  0x6a   : > { %794 = vmatpush1.bf16.msra.mxu1 %v1465_v18  ;;  %1299 = vmatprep.subr.bf16.mxu0 %v1473_v34 }
  0x6d   : > { %1276 = vmatmul.mubr.msk.bf16.vlgmr.msra.gmra.mxu1 %vm775_vm1, %v1466_v19  ;;  %1300 = vmatpush3.bf16.msra.mxu0 %v1474_v35 }
  0x6e   : > { %1301 = vmatprep.subr.bf16.mxu0 %v1475_v36 }
  0x71   : > { %1302 = vmatpush3.bf16.msra.mxu0 %v1476_v37 }
  0x72   : > { %1303 = vmatprep.subr.bf16.mxu0 %v1477_v38 }
  0x75   : > { %1304 = vmatpush3.bf16.msra.mxu0 %v1478_v39 }
  0x76   : > { %1305 = vmatprep.subr.bf16.mxu0 %v1479_v40 }
  0x79   : > { %1306 = vmatpush3.bf16.msra.mxu0 %v1480_v41 }
  0x7a   : > { %1307 = vmatprep.subr.bf16.mxu0 %v1481_v42 }
  0x7d   : > { %1308 = vmatpush3.bf16.msra.mxu0 %v1482_v43 }
  0x80   : > { %711 = vmatmul.mubr.bf16.vlgmr.msra.gmra.mxu0 %v548_v45 }
 0x12d   : > { %v1805_v20 = vpop.f32.mrf.mxu1 }
 0x12f   : > { %v1807_v21 = vpop.f32.mrf.mxu1 }
 0x130   : > { %v824_v22 = vmax.f32 %v1805_v20, %v1807_v21 }
 0x131   : > { %v1811_v23 = vpop.f32.mrf.mxu1 }
 0x132   : > { %825 = vmax.xlane.f32.xlu0 %v824_v22 }
 0x133   : > { %v1813_v24 = vpop.f32.mrf.mxu1 }
 0x134   : > { %v827_v25 = vmax.f32 %v1811_v23, %v1813_v24 }
 0x136   : > { %828 = vmax.xlane.f32.xlu0 %v827_v25 }
 0x140   : > { %v1309_v54 = vpop.f32.mrf.mxu0 }
 0x142   : > { %v1310_v56 = vpop.f32.mrf.mxu0 }
 0x143   : > { %v1311_v57 = vadd.f32 %v1310_v56, %v1309_v54 }
 0x144   : > { %v1312_v58 = vpop.f32.mrf.mxu0 }
 0x145   : > { %v718_v59 = vadd.f32 %v1311_v57, %v545_v55 }
 0x146   : > { %v1313_v60 = vpop.f32.mrf.mxu0 }
 0x147   : > { %719 = vst [vmem:[#allocation2] sm:$0xff] %v718_v59 }
 0x1bb   : > { %v826_v47 = vpop.xlane.xlu0 %825 }
 0x1bc   : > { %v830_v48 = vmax.f32 %v822_v46, %v826_v47 }
 0x1be   : > { %v834_v50 = vsub.f32 %v822_v46, %v830_v48  ;;  %875 = vst.msk [vmem:[#allocation3] sm:$0xff] %vm872_vm2, %v830_v48  ;;  %844 = vperm.xlu1 %1452, %v830_v48  }
 0x1bf   : > { %v829_v51 = vpop.xlane.xlu0 %828 }
 0x1c0   : > { %v831_v52 = vmax.f32 %v823_v49, %v829_v51  ;;  %v836_v13 = vmul.f32 1.442695, %v834_v50 }
 0x1c2   : > { %v835_v53 = vsub.f32 %v823_v49, %v831_v52  ;;  %876 = vst.msk [vmem:[#allocation3 + $0x8] sm:$0xff] %vm872_vm2, %v831_v52  ;;  %849 = vperm.xlu1 %1452, %v831_v52  }
 0x1c4   : > { %v838_v14 = vmul.f32 1.442695, %v835_v53 }
 0x239   : > { %v845_v61 = vpop.permute.xlu1 %844 }
 0x23a   : > { %v852_v62 = vsub.f32 %v1805_v20, %v845_v61  ;;  %v853_v63 = vsub.f32 %v1807_v21, %v845_v61  ;;  %v833_v20 = vld [vmem:[#allocation4 + $0x8] sm:$0xff] }
 0x23c   : > { %v856_v0 = vmul.f32 1.442695, %v852_v62  ;;  %v858_v1 = vmul.f32 1.442695, %v853_v63 }
 0x23d   : > { %v850_v2 = vpop.permute.xlu1 %849 }
 0x23e   : > { %1483 = vpow2.f32 %v856_v0  ;;  %v854_v3 = vsub.f32 %v1811_v23, %v850_v2  ;;  %v855_v4 = vsub.f32 %v1813_v24, %v850_v2 }
 0x23f   : > { %1485 = vpow2.f32 %v858_v1 }
 0x240   : > { %v860_v5 = vmul.f32 1.442695, %v854_v3  ;;  %v862_v6 = vmul.f32 1.442695, %v855_v4 }
 0x242   : > { %1487 = vpow2.f32 %v860_v5 }
 0x243   : > { %1489 = vpow2.f32 %v862_v6 }
 0x244   : > { %1491 = vpow2.f32 %v836_v13 }
 0x245   : > { %1493 = vpow2.f32 %v838_v14 }
 0x24b   : > { %v1484_v7 = vpop.eup %1483 }
 0x24c   : > { %v1486_v8 = vpop.eup %1485 }
 0x24d   : > { %v864_v9 = vadd.f32 %v1486_v8, %v1484_v7 }
 0x24f   : > { %v1488_v10 = vpop.eup %1487  ;;  %865 = vadd.xlane.f32.xlu0 %v864_v9 }
 0x250   : > { %v1490_v11 = vpop.eup %1489 }
 0x251   : > { %v867_v12 = vadd.f32 %v1490_v11, %v1488_v10  ;;  %v1492_v15 = vpop.eup %1491 }
 0x252   : > { %v840_v17 = vmul.f32 %v1492_v15, %v832_v16  ;;  %v1494_v18 = vpop.eup %1493 }
 0x253   : > { %868 = vadd.xlane.f32.xlu1 %v867_v12  ;;  %v841_v22 = vmul.f32 %v1494_v18, %v833_v20 }
 0x2d8   : > { %v866_v19 = vpop.xlane.xlu0 %865 }
 0x2d9   : > { %v870_v21 = vadd.f32 %v866_v19, %v840_v17 }
 0x2db   : > { %873 = vst.msk [vmem:[#allocation4] sm:$0xff] %vm872_vm2, %v870_v21  ;;  %880 = sbr.rel (%p1277_p13) target bundleno = 1539 (0x603), region = 110 }
 0x2dc   : > { %v869_v23 = vpop.xlane.xlu1 %868 }
 0x2dd   : > { %v871_v24 = vadd.f32 %v869_v23, %v841_v22 }
 0x2df   : > { %874 = vst.msk [vmem:[#allocation4 + $0x8] sm:$0xff] %vm872_vm2, %v871_v24 }
 0x2e0   : > { %v1495_v25 = vld [vmem:[#allocation7 + $0x38] sm:$0xff]   ;;  %v1610_v26 = vmov 0.0   ;;  %v1496_v27 = vld [vmem:[#allocation7 + $0x30] sm:$0xff]   ;;  %vm1611_vm3 = vmmov 0   ;;  %v1497_v28 = vld [vmem:[#allocation7 + $0x28] sm:$0xff]   ;;  %vm1111_vm4 = vcmask 130048  }
 0x2e1   : > { %1341 = vmatprep.subr.bf16.mxu0 %v1610_v26  ;;  %1361 = vmatprep.subr.mxu1 %v1610_v26  ;;  %v1019_v29 = vld [vmem:[%s1972_s5 + $0x78] sm:$0xff]  ;;  %v1018_v30 = vld [vmem:[%s1972_s5 + $0x70] sm:$0xff]  ;;  %v1498_v31 = vld [vmem:[#allocation7 + $0x20] sm:$0xff]  }
 0x2e2   : > { %1342 = vmatpush3.bf16.msra.mxu0 %v1495_v25  ;;  %1357 = vmatprep.mubr.msk.bf16.mxu0 %vm1611_vm3, %v1610_v26  ;;  %v1017_v32 = vld [vmem:[%s1972_s5 + $0x68] sm:$0xff]  ;;  %v1016_v33 = vld [vmem:[%s1972_s5 + $0x60] sm:$0xff]  ;;  %v1015_v35 = vld [vmem:[%s1972_s5 + $0x58] sm:$0xff] }
 0x2e3   : > { %1343 = vmatprep.subr.bf16.mxu0 %v1610_v26  ;;  %1393 = vmatprep.mubr.msk.f32.mxu1 %vm1611_vm3, %v1610_v26  ;;  %v1499_v34 = vld [vmem:[#allocation7 + $0x18] sm:$0xff]   ;;  %v1014_v36 = vld [vmem:[%s1972_s5 + $0x50] sm:$0xff]  ;;  %v1500_v37 = vld [vmem:[#allocation7 + $0x10] sm:$0xff]  }
 0x2e4   : > { %1362 = vmatpush3.msra.mxu1 %v1019_v29  ;;  %v881_v38 = vld [vmem:[#allocation2] sm:$0xff]  ;;  %v1013_v40 = vld [vmem:[%s1972_s5 + $0x48] sm:$0xff]  ;;  %v1501_v43 = vld [vmem:[#allocation7 + $0x8] sm:$0xff]  }
 0x2e5   : > { %1363 = vmatprep.subr.mxu1 %v1610_v26  ;;  %v1278_v39 = vld [vmem:[%s1969_s2] ss:$0 sm:$0xff]  ;;  %v1011_v44 = vld [vmem:[%s1972_s5 + $0x38] sm:$0xff]  ;;  %v1010_v45 = vld [vmem:[%s1972_s5 + $0x30] sm:$0xff] }
 0x2e6   : > { %1344 = vmatpush3.bf16.msra.mxu0 %v1496_v27  ;;  %1364 = vmatpush3.msra.mxu1 %v1018_v30  ;;  %v1012_v41 = vld [vmem:[%s1972_s5 + $0x40] sm:$0xff]  ;;  %v889_v42 = vadd.f32 %v1278_v39, %v881_v38  ;;  %v1502_v47 = vld [vmem:[#allocation7] sm:$0xff]   ;;  %v1007_v51 = vld [vmem:[%s1972_s5 + $0x18] sm:$0xff] }
 0x2e7   : > { %1345 = vmatprep.subr.bf16.mxu0 %v1610_v26  ;;  %1365 = vmatprep.subr.mxu1 %v1610_v26  ;;  %v1009_v48 = vld [vmem:[%s1972_s5 + $0x28] sm:$0xff]  ;;  %v1008_v49 = vld [vmem:[%s1972_s5 + $0x20] sm:$0xff]  ;;  %v1006_v52 = vld [vmem:[%s1972_s5 + $0x10] sm:$0xff] }
 0x2e8   : > { %1366 = vmatpush3.msra.mxu1 %v1017_v32  ;;  %v890_v46 = vmax.f32 %v889_v42, 0.0  ;;  %v1005_v53 = vld [vmem:[%s1972_s5 + $0x8] sm:$0xff]  ;;  %v1004_v54 = vld [vmem:[%s1972_s5] sm:$0xff]  ;;  %v1130_v18 = vld [vmem:[#allocation3 + $0x8] sm:$0xff] }
 0x2e9   : > { %1367 = vmatprep.subr.mxu1 %v1610_v26  ;;  %v1279_v55 = vld [vmem:[%s1971_s4] ss:$0 sm:$0xff]  ;;  %v1129_v17 = vld [vmem:[#allocation3] sm:$0xff]  ;;  %v1133_v19 = vld [vmem:[#allocation4] sm:$0xff]  ;;  %1132 = vst.msk [vmem:[%s1978_s11 + $0x8] sm:$0xff] %vm872_vm2, %v1130_v18 }
 0x2ea   : > { %1346 = vmatpush3.bf16.msra.mxu0 %v1497_v28  ;;  %1368 = vmatpush3.msra.mxu1 %v1016_v33  ;;  %v891_v50 = vpack.c.bf16 %v890_v46, %v890_v46  ;;  %v1288_v62 = vld [vmem:[%s1973_s6] ss:$0 sm:$0xff]  ;;  %1131 = vst.msk [vmem:[%s1978_s11] sm:$0xff] %vm872_vm2, %v1129_v17  ;;  %1135 = vst.msk [vmem:[%s1979_s12] sm:$0xff] %vm872_vm2, %v1133_v19 }
 0x2eb   : > { %1347 = vmatprep.subr.bf16.mxu0 %v1610_v26  ;;  %1369 = vmatprep.subr.mxu1 %v1610_v26  ;;  %v1134_v20 = vld [vmem:[#allocation4 + $0x8] sm:$0xff] }
 0x2ec   : > { %1370 = vmatpush3.msra.mxu1 %v1015_v35  ;;  %1136 = vst.msk [vmem:[%s1979_s12 + $0x8] sm:$0xff] %vm872_vm2, %v1134_v20 }
 0x2ed   : > { %1371 = vmatprep.subr.mxu1 %v1610_v26 }
 0x2ee   : > { %1348 = vmatpush3.bf16.msra.mxu0 %v1498_v31  ;;  %1372 = vmatpush3.msra.mxu1 %v1014_v36 }
 0x2ef   : > { %1349 = vmatprep.subr.bf16.mxu0 %v1610_v26  ;;  %1373 = vmatprep.subr.mxu1 %v1610_v26 }
 0x2f0   : > { %1374 = vmatpush3.msra.mxu1 %v1013_v40 }
 0x2f1   : > { %1375 = vmatprep.subr.mxu1 %v1610_v26 }
 0x2f2   : > { %1350 = vmatpush3.bf16.msra.mxu0 %v1499_v34  ;;  %1376 = vmatpush3.msra.mxu1 %v1012_v41 }
 0x2f3   : > { %1351 = vmatprep.subr.bf16.mxu0 %v1610_v26  ;;  %1377 = vmatprep.subr.mxu1 %v1610_v26 }
 0x2f4   : > { %1378 = vmatpush3.msra.mxu1 %v1011_v44 }
 0x2f5   : > { %1379 = vmatprep.subr.mxu1 %v1610_v26 }
 0x2f6   : > { %1352 = vmatpush3.bf16.msra.mxu0 %v1500_v37  ;;  %1380 = vmatpush3.msra.mxu1 %v1010_v45 }
 0x2f7   : > { %1353 = vmatprep.subr.bf16.mxu0 %v1610_v26  ;;  %1381 = vmatprep.subr.mxu1 %v1610_v26 }
 0x2f8   : > { %1382 = vmatpush3.msra.mxu1 %v1009_v48 }
 0x2f9   : > { %1383 = vmatprep.subr.mxu1 %v1610_v26 }
 0x2fa   : > { %1354 = vmatpush3.bf16.msra.mxu0 %v1501_v43  ;;  %1384 = vmatpush3.msra.mxu1 %v1008_v49 }
 0x2fb   : > { %1355 = vmatprep.subr.bf16.mxu0 %v1610_v26  ;;  %1385 = vmatprep.subr.mxu1 %v1610_v26 }
 0x2fc   : > { %1386 = vmatpush3.msra.mxu1 %v1007_v51 }
 0x2fd   : > { %1387 = vmatprep.subr.mxu1 %v1610_v26 }
 0x2fe   : > { %1356 = vmatpush3.bf16.msra.mxu0 %v1502_v47  ;;  %1388 = vmatpush3.msra.mxu1 %v1006_v52 }
 0x2ff   : > { %1389 = vmatprep.subr.mxu1 %v1610_v26 }
 0x300   : > { %1390 = vmatpush3.msra.mxu1 %v1005_v53 }
 0x301   : > { %1358 = vmatmul.mubr.bf16.vlgmr.msra.gmra.mxu0 %v891_v50  ;;  %1391 = vmatprep.subr.mxu1 %v1610_v26 }
 0x302   : > { %1392 = vmatpush3.msra.mxu1 %v1004_v54 }
 0x3c1   : > { %v997_v56 = vpop.f32.mrf.mxu0 }
 0x3c2   : > { %v998_v57 = vadd.f32 %v1279_v55, %v997_v56 }
 0x3c3   : > { %v1359_v58 = vpop.f32.mrf.mxu0 }
 0x3c4   : > { %v1003_v59 = vmax.f32 %v998_v57, 0.0 }
 0x3c5   : > { %v1000_v60 = vpop.f32.mrf.mxu0 }
 0x3c6   : > { %1394 = vmatmul.mubr.f32.vlgmr.msra.gmra.mxu1 %v1003_v59 }
 0x3c7   : > { %v1360_v61 = vpop.f32.mrf.mxu0 }
 0x486   : > { %v1093_v63 = vpop.f32.mrf.mxu1 }
 0x487   : > { %v1094_v0 = vadd.f32 %v1288_v62, %v1093_v63 }
 0x488   : > { %v1395_v1 = vpop.f32.mrf.mxu1 }
 0x489   : > { %v1100_v2 = vmul.f32 %v1094_v0, %v1094_v0  ;;  %v1117_v3 = vsel %vm1111_vm4, %v1094_v0, -inf  ;;  %v1097_v4 = vmul.f32 1.442695, %v1094_v0 }
 0x48b   : > { %1102 = vrot.lane.b32.xlu0 %v1100_v2, %s1612_s15  ;;  %1503 = vpow2.f32 %v1097_v4 }
 0x498   : > { %v1504_v5 = vpop.eup %1503 }
 0x499   : > { %v1099_v6 = vsub.f32 1.0, %v1504_v5 }
 0x4aa   : > { %1118 = vmax.xlane.f32.xlu0 %v1117_v3 }
 0x4fd   : > { %v1103_v7 = vpop.permute.xlu0 %1102 }
 0x4fe   : > { %v1105_v8 = vsub.f32 %v1099_v6, %v1103_v7 }
 0x500   : > { %v1106_v9 = vadd.f32 %v1105_v8, %v1094_v0 }
 0x502   : > { %1108 = vrot.lane.b32.xlu1 %v1106_v9, %s1613_s17 }
 0x533   : > { %v1119_v10 = vpop.xlane.xlu0 %1118 }
 0x534   : > { %v1120_v11 = vsub.f32 %v1094_v0, %v1119_v10 }
 0x536   : > { %v1121_v12 = vmul.f32 1.442695, %v1120_v11 }
 0x538   : > { %1505 = vpow2.f32 %v1121_v12 }
 0x545   : > { %v1506_v13 = vpop.eup %1505 }
 0x546   : > { %v1123_v14 = vsel %vm1111_vm4, %v1506_v13, 0.0 }
 0x547   : > { %1124 = vadd.xlane.f32.xlu1 %v1123_v14 }
 0x574   : > { %v1109_v15 = vpop.permute.xlu1 %1108 }
 0x575   : > { %v1112_v16 = vsel %vm1111_vm4, %v1109_v15, 0.0 }
 0x576   : > { %1113 = vadd.xlane.f32.xlu0 %v1112_v16 }
 0x5d0   : > { %v1125_v21 = vpop.xlane.xlu1 %1124 }
 0x5d1   : > { %1507 = vrcp.f32 %v1125_v21 }
 0x5de   : > { %v1508_v22 = vpop.eup %1507 }
 0x5df   : > { %v1127_v23 = vmul.f32 %v1508_v22, %v1506_v13 }
 0x5e1   : > { %1128 = vst.msk [vmem:[%s1977_s10] sm:$0xff] %vm1111_vm4, %v1127_v23 }
 0x5ff   : > { %v1114_v24 = vpop.xlane.xlu0 %1113 }
 0x600   : > { %v1115_v25 = vmul.f32 -0.5, %v1114_v24 }
 0x602   : > { %1116 = vst.msk [vmem:[%s1976_s9] sm:$0xff] %vm872_vm2, %v1115_v25 }
 0x603 PF: > { %s1997_s24 = sld [smem:[#allocation13_spill]]  ;;  %s2000_s21 = smov %s1591_s22 }
 0x604   : > { %s1998_s13 = sld [smem:[#allocation12_spill]] }
 0x605   : > { %s1999_s23 = sld [smem:[#allocation14_spill]] }
 0x609   : > { %p24_p0 = scmp.ge.s32.totalorder %s1997_s24, 4  }
 0x60a   : > { %s2001_s22 = smov %s1998_s13 }
 0x60b   :  { %26 = sbr.rel (!%p24_p0) target bundleno = 6 (0x6), region = 177 }
 0x610   :  { %1166 = vsyncpa [#allocation6], 1 }
 0x611   :  { %1168 = vsyncpa [#allocation6 + $0x1], 1 }
 0x612   :  { %1169 = vsyncpa [#allocation8], 1 }

</bundles_post_ra>
